<compile_context>
chip_gen: v6e
topology: v6e:2x2x1
jax: 0.10.0
libtpu: 0.0.40
codegen_flags: <defaults>
</compile_context>

<pallas_src>
import functools

import jax
import jax.numpy as jnp
from jax import lax
from jax.experimental import pallas as pl
from jax.experimental.pallas import tpu as pltpu


def _gem_kernel(x_ref, p_ref, o_ref, acc_ref, *, eps, hw, thw):
    # x_ref: (1, TC, THW)   p_ref: (TC, 1)   o_ref: (1, TC, 1)
    # acc_ref: (TC, 1) f32 running spatial sum (persists across the k axis).
    k = pl.program_id(2)

    @pl.when(k == 0)
    def _init():
        acc_ref[...] = jnp.zeros_like(acc_ref)

    x = x_ref[0].astype(jnp.float32)          # (TC, THW)
    p = p_ref[...].astype(jnp.float32)        # (TC, 1) -> broadcasts over lanes

    xp = jnp.power(x + eps, p)                # EUP: exp(p * log(x + eps))

    if hw % thw != 0:
        # Last HW tile is partial: zero out-of-range lanes (trace-time guard,
        # so evenly-dividing shapes pay nothing). Garbage lanes may be NaN
        # after pow; jnp.where discards them.
        hw_idx = k * thw + lax.broadcasted_iota(jnp.int32, xp.shape, 1)
        xp = jnp.where(hw_idx < hw, xp, 0.0)

    if thw % 128 == 0:
        # Spatial sum on the otherwise-idle MXU: (TC, THW) @ (THW, 1) -> (TC, 1).
        ones_col = jnp.ones((thw, 1), jnp.float32)
        acc_ref[...] += jnp.dot(xp, ones_col, preferred_element_type=jnp.float32)
    else:
        # Odd lane counts (e.g. 7x7 = 49 feature maps): plain lane reduction.
        acc_ref[...] += jnp.sum(xp, axis=-1, keepdims=True)

    @pl.when(k == pl.num_programs(2) - 1)
    def _finalize():
        mean = acc_ref[...] * (1.0 / hw)
        o_ref[0] = jnp.power(mean, 1.0 / p).astype(o_ref.dtype)


# ~8 MiB of f32 per x block (double-buffered -> ~16 MiB, inside scoped VMEM).
_VMEM_BUDGET_ELEMS = 2 * 1024 * 1024


def _pick_tiles(c, hw, max_c_tile, max_hw_tile):
    # HW tile: full dim if it fits (always a legal block), else the largest
    # multiple of 128 not exceeding the cap; the remainder is masked in-kernel.
    if hw <= max_hw_tile:
        thw = hw
    else:
        thw = max(128, (max_hw_tile // 128) * 128)

    # C tile: as many channels as the VMEM budget allows -- a multiple of 8
    # that divides C so every block is full. Fall back to full C (legal block)
    # for shapes with no such divisor.
    cap = min(c, max_c_tile, max(8, _VMEM_BUDGET_ELEMS // max(thw, 1)))
    if c <= cap:
        return c, thw
    tc = None
    for t in range((cap // 8) * 8, 7, -8):
        if c % t == 0:
            tc = t
            break
    if tc is None:
        tc = c
    return tc, thw


def gem_pallas(x_nchw, p, eps=1e-6, *, max_hw_tile=2048, max_c_tile=2048):
    """GeM pooling. x_nchw: (B, C, H, W), p: (C,). Returns (B, C)."""
    B, C, H, W = x_nchw.shape
    HW = H * W

    x_flat = x_nchw.reshape(B, C, HW)   # free: H, W are contiguous in NCHW
    p_col = p.reshape(C, 1)

    tc, thw = _pick_tiles(C, HW, max_c_tile, max_hw_tile)
    grid = (B, pl.cdiv(C, tc), pl.cdiv(HW, thw))

    out = pl.pallas_call(
        functools.partial(_gem_kernel, eps=eps, hw=HW, thw=thw),
        out_shape=jax.ShapeDtypeStruct((B, C, 1), x_nchw.dtype),
        grid_spec=pltpu.PrefetchScalarGridSpec(
            num_scalar_prefetch=0,
            grid=grid,
            in_specs=[
                pl.BlockSpec((1, tc, thw), lambda b, ci, k: (b, ci, k)),
                pl.BlockSpec((tc, 1), lambda b, ci, k: (ci, 0)),
            ],
            out_specs=pl.BlockSpec((1, tc, 1), lambda b, ci, k: (b, ci, 0)),
            scratch_shapes=[pltpu.VMEM((tc, 1), jnp.float32)],
        ),
        compiler_params=pltpu.CompilerParams(
            dimension_semantics=("parallel", "parallel", "arbitrary"),
            vmem_limit_bytes=32 * 1024 * 1024,
        ),
    )(x_flat, p_col)
    return out.reshape(B, C)


def gem_reference(x_nchw, p, eps=1e-6):
    # Pure-JAX reference mirroring the PyTorch module exactly.
    xt = jnp.transpose(x_nchw, (0, 3, 2, 1))        # torch.transpose(x, 1, -1)
    xt = jnp.power(xt + eps, p)                     # p broadcasts on channel dim
    xt = jnp.transpose(xt, (0, 3, 2, 1))            # back to NCHW
    pooled = jnp.mean(xt, axis=(2, 3))              # avg_pool over full H, W
    return jnp.power(pooled, 1.0 / p)


if __name__ == "__main__":
    k1, k2, k3 = jax.random.split(jax.random.PRNGKey(0), 3)
    eps = 1e-6

    # --- Test 1: small shapes consistent with the module (B=2, C=4, 16x16).
    B, C, H, W = 2, 4, 16, 16
    p_param = jnp.ones((C,), dtype=jnp.float32) * 3.0   # nn.Parameter(ones(dim)*p)
    # Non-negative inputs (GeM normally follows a ReLU; keeps pow real).
    x = jnp.abs(jax.random.normal(k1, (B, C, H, W), dtype=jnp.float32))

    out = jax.block_until_ready(gem_pallas(x, p_param, eps))
    ref = gem_reference(x, p_param, eps)
    assert out.shape == (B, C)
    assert jnp.allclose(out, ref, rtol=1e-4, atol=1e-5), (out, ref)

    # --- Test 2: exercises C tiling, the HW reduction axis and the masked
    # partial last HW tile (HW = 900 -> 512 + 388 with max_hw_tile=512).
    B2, C2, H2, W2 = 2, 256, 30, 30
    p2 = jnp.linspace(2.0, 4.0, C2, dtype=jnp.float32)
    x2 = jnp.abs(jax.random.normal(k2, (B2, C2, H2, W2), dtype=jnp.float32))

    out2 = jax.block_until_ready(
        gem_pallas(x2, p2, eps, max_hw_tile=512, max_c_tile=128))
    ref2 = gem_reference(x2, p2, eps)
    assert out2.shape == (B2, C2)
    assert jnp.allclose(out2, ref2, rtol=2e-4, atol=1e-5), (out2, ref2)

    # --- Test 3: typical GeM usage (dim=2048 backbone features, 7x7 map);
    # exercises the full-C block (single grid step per batch element) and the
    # non-128-multiple THW reduction path.
    B3, C3, H3, W3 = 2, 2048, 7, 7
    p3 = jnp.ones((C3,), dtype=jnp.float32) * 3.0
    x3 = jnp.abs(jax.random.normal(k3, (B3, C3, H3, W3), dtype=jnp.float32))

    out3 = jax.block_until_ready(gem_pallas(x3, p3, eps))
    ref3 = gem_reference(x3, p3, eps)
    assert out3.shape == (B3, C3)
    assert jnp.allclose(out3, ref3, rtol=2e-4, atol=1e-5), (out3, ref3)

    print("KERNEL_OK")
</pallas_src>

<mosaic_0001>
module attributes {stable_mosaic.version = 11 : i64} {
  func.func @_gem_kernel(%arg0: i32, %arg1: i32, %arg2: i32, %arg3: memref<1x4x256xf32, #tpu.memory_space<vmem>>, %arg4: memref<4x1xf32, #tpu.memory_space<vmem>>, %arg5: memref<1x4x1xf32, #tpu.memory_space<vmem>>, %arg6: memref<4x1xf32, #tpu.memory_space<vmem>>) attributes {dimension_semantics = [#tpu.dimension_semantics<parallel>, #tpu.dimension_semantics<parallel>, #tpu.dimension_semantics<arbitrary>], iteration_bounds = array<i64: 2, 1, 1>, scalar_prefetch = 0 : i64, scratch_operands = 1 : i64, tpu.core_type = #tpu.core_type<tc>, window_params = [{transform_indices = @transform_0, window_bounds = array<i64: 1, 4, 256>}, {transform_indices = @transform_1, window_bounds = array<i64: 4, 1>}, {transform_indices = @transform_2, window_bounds = array<i64: 1, 4, 1>}]} {
    %c0_i32 = arith.constant 0 : i32
    %0 = arith.cmpi eq, %arg2, %c0_i32 : i32
    %1 = arith.extui %0 : i1 to i32
    %c0_i32_0 = arith.constant 0 : i32
    %2 = arith.cmpi ne, %1, %c0_i32_0 : i32
    scf.if %2 {
      %cst_13 = arith.constant 0.000000e+00 : f32
      %18 = vector.broadcast %cst_13 : f32 to vector<4x1xf32>
      %c0_14 = arith.constant 0 : index
      %c0_15 = arith.constant 0 : index
      %19 = vector.load %arg6[%c0_14, %c0_15] : memref<4x1xf32, #tpu.memory_space<vmem>>, vector<4x1xf32>
      tpu.vector_store %arg6[%c0_14, %c0_15], %18 {strides = array<i32>} : memref<4x1xf32, #tpu.memory_space<vmem>>, vector<4x1xf32>,
    } else {
    }
    %c0 = arith.constant 0 : index
    %c0_1 = arith.constant 0 : index
    %c0_2 = arith.constant 0 : index
    %3 = vector.load %arg3[%c0, %c0_1, %c0_2] : memref<1x4x256xf32, #tpu.memory_space<vmem>>, vector<1x4x256xf32>
    %4 = vector.shape_cast %3 : vector<1x4x256xf32> to vector<4x256xf32>
    %c0_3 = arith.constant 0 : index
    %c0_4 = arith.constant 0 : index
    %5 = vector.load %arg4[%c0_3, %c0_4] : memref<4x1xf32, #tpu.memory_space<vmem>>, vector<4x1xf32>
    %cst = arith.constant 9.99999997E-7 : f32
    %6 = vector.broadcast %cst : f32 to vector<4x256xf32>
    %7 = arith.addf %4, %6 : vector<4x256xf32>
    %8 = vector.broadcast %5 : vector<4x1xf32> to vector<4x256xf32>
    %9 = math.powf %7, %8 : vector<4x256xf32>
    %cst_5 = arith.constant 1.000000e+00 : f32
    %10 = vector.broadcast %cst_5 : f32 to vector<256x1xf32>
    %c0_6 = arith.constant 0 : index
    %c0_7 = arith.constant 0 : index
    %11 = vector.load %arg6[%c0_6, %c0_7] : memref<4x1xf32, #tpu.memory_space<vmem>>, vector<4x1xf32>
    %cst_8 = arith.constant dense<0.000000e+00> : vector<4x1xf32>
    %12 = tpu.matmul %9, %10, %cst_8 {dimension_numbers = #tpu.dot_dimension_numbers<[1], [0], [0], [1], [0, 0, 1, 1], [], []>} : vector<4x256xf32>, vector<256x1xf32>, vector<4x1xf32> -> vector<4x1xf32>
    %13 = arith.addf %11, %12 : vector<4x1xf32>
    %c0_9 = arith.constant 0 : index
    %c0_10 = arith.constant 0 : index
    %14 = vector.load %arg6[%c0_9, %c0_10] : memref<4x1xf32, #tpu.memory_space<vmem>>, vector<4x1xf32>
    tpu.vector_store %arg6[%c0_9, %c0_10], %13 {strides = array<i32>} : memref<4x1xf32, #tpu.memory_space<vmem>>, vector<4x1xf32>,
    %c0_i32_11 = arith.constant 0 : i32
    %15 = arith.cmpi eq, %arg2, %c0_i32_11 : i32
    %16 = arith.extui %15 : i1 to i32
    %c0_i32_12 = arith.constant 0 : i32
    %17 = arith.cmpi ne, %16, %c0_i32_12 : i32
    scf.if %17 {
      %c0_13 = arith.constant 0 : index
      %c0_14 = arith.constant 0 : index
      %18 = vector.load %arg6[%c0_13, %c0_14] : memref<4x1xf32, #tpu.memory_space<vmem>>, vector<4x1xf32>
      %cst_15 = arith.constant 3.906250e-03 : f32
      %19 = vector.broadcast %cst_15 : f32 to vector<4x1xf32>
      %20 = arith.mulf %18, %19 : vector<4x1xf32>
      %cst_16 = arith.constant 1.000000e+00 : f32
      %21 = vector.broadcast %cst_16 : f32 to vector<4x1xf32>
      %22 = arith.divf %21, %5 : vector<4x1xf32>
      %23 = math.powf %20, %22 : vector<4x1xf32>
      %c0_17 = arith.constant 0 : index
      %c0_18 = arith.constant 0 : index
      %c0_19 = arith.constant 0 : index
      %24 = vector.load %arg5[%c0_17, %c0_18, %c0_19] : memref<1x4x1xf32, #tpu.memory_space<vmem>>, vector<1x4x1xf32>
      %25 = vector.shape_cast %24 : vector<1x4x1xf32> to vector<4x1xf32>
      %26 = vector.shape_cast %23 : vector<4x1xf32> to vector<1x4x1xf32>
      tpu.vector_store %arg5[%c0_17, %c0_18, %c0_19], %26 {strides = array<i32>} : memref<1x4x1xf32, #tpu.memory_space<vmem>>, vector<1x4x1xf32>,
    } else {
    }
    return
  }
  func.func @transform_0(%arg0: i32, %arg1: i32, %arg2: i32) -> (i32, i32, i32) {
    %c0_i32 = arith.constant 0 : i32
    return %arg0, %arg1, %arg2 : i32, i32, i32
  }
  func.func @transform_1(%arg0: i32, %arg1: i32, %arg2: i32) -> (i32, i32) {
    %c0_i32 = arith.constant 0 : i32
    %c0_i32_0 = arith.constant 0 : i32
    return %arg1, %c0_i32 : i32, i32
  }
  func.func @transform_2(%arg0: i32, %arg1: i32, %arg2: i32) -> (i32, i32, i32) {
    %c0_i32 = arith.constant 0 : i32
    %c0_i32_0 = arith.constant 0 : i32
    return %arg0, %arg1, %c0_i32 : i32, i32, i32
  }
}

</mosaic_0001>

<bundles_post_ra>
// kernel: tpu_custom_call.1
= control target key start
LH: loop header
LB: loop body
LE: loop exit
PB: predicated region body
PF: predicated region fallthrough
CT: control target
= control target key end

     0   :  { %7 = vsyncpa [#allocation4], 0  ;;  %s931_s0 = inlined_call_operand.hbm [shape: f32[2,4,256], index: 0, kind: input, shape index: {}]   ;;  %s932_s1 = inlined_call_operand.vmem [shape: f32[4,1], index: 1, kind: input, shape index: {}]   ;;  %s933_s2 = inlined_call_operand.vmem [shape: f32[2,4,1], index: 2, kind: output, shape index: {}]  }
   0x1   :  { %9 = vsyncpa [#allocation4 + $0x1], 0  ;;  %s752_s9 = smov 0   ;;  %s754_s10 = smov 0  }
   0x2   :  { %s756_s11 = smov 0   ;;  %s758_s12 = smov 0  }
   0x3   :  { %s760_s13 = smov 0   ;;  %s762_s14 = smov 0  }
   0x4 LB: > { %s427_s15 = sadd.s32 4294967295, %s729_s14   ;;  %s34_s16 = sadd.s32 1, %s725_s13  ;;  %s729_s14 = sphi %s762_s14, %s15_s14   ;;  %s725_s13 = sphi %s760_s13, %s949_s13   ;;  %s721_s12 = sphi %s758_s12, %s948_s12   ;;  %s717_s11 = sphi %s756_s11, %s947_s11   ;;  %s713_s10 = sphi %s754_s10, %s946_s10   ;;  %s709_s9 = sphi %s752_s9, %s945_s9  }
   0x5   : > { %p36_p0 = scmp.ge.s32.totalorder %s34_s16, 2  ;;  %s45_s17 = sadd.s32 1, %s717_s11 }
   0x6   : > { %p52_p1 = scmp.ne.s32.totalorder %s717_s11, %s713_s10  ;;  %p53_p2 = scmp.eq.s32.totalorder %s729_s14, 0 }
   0x7   : > { %s951_s16 = smov (%p36_p0, %s34_s16), 0  ;;  %p58_p4 = scmp.ne.s32.totalorder %s713_s10, %s709_s9 }
   0x8   : > { %p788_p3 = por %p53_p2, %p52_p1  ;;  %s38_s19 = ssub.s32 %s725_s13, %s951_s16 }
   0x9   : > { %p59_p5 = scmp.eq.s32.totalorder %s427_s15, 0  ;;  %p43_p6 = scmp.eq.s32.totalorder %s38_s19, 0 }
   0xa   : > { %p586_p8 = scmp.lt.s32.totalorder %s729_s14, 2  ;;  %s143_s22 = sand.u32 1, %s717_s11  }
   0xb   : > { %p795_p7 = por %p59_p5, %p58_p4  ;;  %s440_s23 = sshll.u32 %s725_s13, 7 }
   0xc   : > { %s801_s21 = scalar_select %p43_p6, %s717_s11, %s45_s17  }
   0xd   : > { %s432_s24 = sshll.u32 %s143_s22, 3  ;;  %s157_s27 = scalar_lea.hbm %s931_s0, %s440_s23 }
   0xe   : > { %s147_s28 = scalar_lea.vmem [#allocation3], %s432_s24  ;;  %p810_p9 = pnand %p586_p8, %p788_p3 }
   0xf   : > { %s159_s29 = sshll.u32 %s147_s28, 4  ;;  %p435_p10 = scmp.ge.s32.totalorder %s729_s14, 1  ;;  %s160_s29 = int_to_ptr.vmem [resolvable:$true] %s159_s29 }
  0x10   : > { %p164_p11 = scmp.lt.s32.totalorder %s729_s14, 3  ;;  %s144_s3 = scalar_lea.sflag [#allocation4], %s143_s22 }
  0x11   : > { %p653_p12 = pneg %p810_p9  ;;  %s664_s4 = scalar_lea.vmem %s160_s29, 128 }
  0x12   : > { %p665_p13 = scmp.ne.s32.totalorder %s160_s29, %s664_s4  ;;  %s731_s5 = smov [#allocation3]  }
  0x13   : > { %s669_s6 = sshll.u32 %s731_s5, 4  ;;  %s670_s6 = int_to_ptr.vmem [resolvable:$false] %s669_s6 }
  0x14   : > { %p667_p0 = pnand %p665_p13, %p653_p12  ;;  %s671_s7 = scalar_lea.vmem %s670_s6, 256 }
  0x15   : > { %p672_p2 = scmp.lt.s32.totalorder %s160_s29, %s670_s6  ;;  %p673_p3 = scmp.lt.s32.totalorder %s671_s7, %s664_s4 }
  0x16   : > { %p668_p1 = pneg %p667_p0 }
  0x17   : > { %p674_p4 = por %p673_p3, %p672_p2 }
  0x19   : > { %p675_p5 = pnand %p674_p4, %p668_p1 }
  0x1b   : > { %678 = shalt.err (!%p675_p5)
}
  0x1c   : > { %585 = dma.hbm_to_vmem [thread:$0]  (!%p810_p9), %s157_s27, 128, %s160_s29, %s144_s3  }
  0x1d   : > { %p165_p6 = pnand %p435_p10, %p164_p11 }
  0x1e   : > { %s170_s8 = sand.u32 (!%p165_p6), 1, %s713_s10  }
  0x1f   : > { %168 = sbr.rel (%p165_p6) target bundleno = 446 (0x1be), region = 28  ;;  %s825_s9 = sshll.u32 (!%p165_p6), %s170_s8, 3 }
  0x20   : > { %s171_s15 = scalar_lea.sflag (!%p165_p6), [#allocation4], %s170_s8  ;;  %s174_s17 = scalar_lea.vmem (!%p165_p6), [#allocation3], %s825_s9 }
  0x24   : > { %704 = dma.done.wait (%p795_p7), %s171_s15, 128  }
  0x25   : > { %706 = vsyncadd (%p795_p7), %s171_s15, 4294967168  ;;  %vm217_vm0 = vcmask 3072   ;;  %v732_v0 = vmov 0.0   ;;  %v733_v1 = vmov 0   ;;  %v734_v2 = vmov 1.0   ;;  %v219_v4 = vld [vmem:[%s174_s17] sm:$0xff] }
  0x26   : > { %218 = vst.msk [vmem:[#allocation2] sm:$0xf] %vm217_vm0, %v732_v0  ;;  %640 = vset.pattern.permute.xlu0 %v733_v1  ;;  %441 = vmatprep.subr.mxu0 %v734_v2  ;;  %v837_v3 = vld [vmem:[%s932_s1] sm:$0xf]  ;;  %v842_v5 = vadd.f32 1e-06, %v219_v4  ;;  %v229_v9 = vlaneseq }
  0x27   : > { %442 = vmatpush3.msra.mxu0 %v734_v2  ;;  %224 = vperm.xlu0 %640, %v837_v3   ;;  %v735_v7 = vmov 839922192   ;;  %v736_v24 = vmov 2139095040   ;;  %p206_p7 = scmp.lt.s32.totalorder %s721_s12, 1 }
  0x28   : > { %443 = vmatprep.subr.mxu0 %v734_v2  ;;  %v476_v6 = vand.u32 2147483647, %v842_v5  ;;  %v227_v8 = vunpack.c.l.s4 %v735_v7  ;;  %v230_v11 = vshrl.u32 %v229_v9, 7  ;;  %vm497_vm4 = vcmp.eq.f32.partialorder %v842_v5, 0 }
  0x29   : > { %444 = vmatpush3.msra.mxu0 %v734_v2  ;;  %vm496_vm9 = vcmp.lt.f32.partialorder %v842_v5, 0  ;;  %s953_s12 = smov (!%p206_p7, %s721_s12), 1 }
  0x2a   : > { %445 = vmatprep.subr.mxu0 %v734_v2  ;;  %641 = vlog2.f32 %v476_v6  ;;  %v228_v10 = vunpack.c.0.s8 %v227_v8  ;;  %vm500_vm5 = vcmp.gt.f32.partialorder %v476_v6, 1065353216  ;;  %s437_s20 = sshll.u32 %s953_s12, 2 }
  0x2b   : > { %446 = vmatpush3.msra.mxu0 %v734_v2  ;;  %s212_s24 = scalar_lea.vmem %s933_s2, %s437_s20 }
  0x2c   : > { %447 = vmatprep.subr.mxu0 %v734_v2  ;;  %v231_v12 = vsub.s32 %v228_v10, %v230_v11 }
  0x2d   : > { %448 = vmatpush3.msra.mxu0 %v734_v2  ;;  %v235_v44 = vld [vmem:[#allocation2] sm:$0xf] }
  0x2e   : > { %449 = vmatprep.subr.mxu0 %v734_v2 }
  0x2f   : > { %450 = vmatpush3.msra.mxu0 %v734_v2 }
  0x30   : > { %451 = vmatprep.subr.mxu0 %v734_v2 }
  0x31   : > { %452 = vmatpush3.msra.mxu0 %v734_v2 }
  0x32   : > { %453 = vmatprep.subr.mxu0 %v734_v2 }
  0x33   : > { %454 = vmatpush3.msra.mxu0 %v734_v2 }
  0x34   : > { %455 = vmatprep.subr.mxu0 %v734_v2 }
  0x35   : > { %456 = vmatpush3.msra.mxu0 %v734_v2 }
  0x36   : > { %457 = vmatprep.subr.mxu0 %v734_v2 }
  0x37   : > { %458 = vmatpush3.msra.mxu0 %v734_v2  ;;  %v642_v13 = vpop.eup %641 }
  0x38   : > { %459 = vmatprep.subr.mxu0 %v734_v2 }
  0x39   : > { %460 = vmatpush3.msra.mxu0 %v734_v2 }
  0x3a   : > { %461 = vmatprep.subr.mxu0 %v734_v2 }
  0x3b   : > { %462 = vmatpush3.msra.mxu0 %v734_v2 }
  0x3c   : > { %463 = vmatprep.subr.mxu0 %v734_v2 }
  0x3d   : > { %464 = vmatpush3.msra.mxu0 %v734_v2 }
  0x3e   : > { %465 = vmatprep.subr.mxu0 %v734_v2 }
  0x3f   : > { %466 = vmatpush3.msra.mxu0 %v734_v2 }
  0x40   : > { %467 = vmatprep.subr.mxu0 %v734_v2 }
  0x41   : > { %468 = vmatpush3.msra.mxu0 %v734_v2 }
  0x42   : > { %469 = vmatprep.subr.mxu0 %v734_v2 }
  0x43   : > { %470 = vmatpush3.msra.mxu0 %v734_v2 }
  0x44   : > { %471 = vmatprep.subr.mxu0 %v734_v2 }
  0x45   : > { %472 = vmatpush3.msra.mxu0 %v734_v2 }
  0xa2   : > { %v225_v14 = vpop.permute.xlu0 %224 }
  0xa3   : > { %v232_v15 = vrot.slane %v225_v14, %v231_v12 }
  0xa5   : > { %v478_v16 = vmul.f32 %v642_v13, %v232_v15  ;;  %v480_v17 = vand.u32 2147483647, %v232_v15  ;;  %v485_v18 = vtrunc.f32 %v232_v15  ;;  %vm484_vm3 = vcmp.lt.f32.partialorder %v232_v15, 0 }
  0xa6   : > { %vm850_vm8 = vmand %vm484_vm3, %vm497_vm4  ;;  %v516_v25 = vsel %vm484_vm3, 0, %v736_v24  ;;  %v504_v28 = vsel %vm484_vm3, 2139095040, %v733_v1 }
  0xa7   : > { %643 = vpow2.f32 %v478_v16  ;;  %v489_v19 = vtrunc.f32 %v480_v17  ;;  %vm481_vm1 = vcmp.eq.f32.partialorder %v480_v17, 2139095040  ;;  %vm486_vm2 = vcmp.ne.f32.partialorder %v232_v15, %v485_v18  ;;  %vm856_vm10 = vmxor %vm484_vm3, %vm500_vm5 }
  0xa8   : > { %vm487_vm6 = vmor %vm486_vm2, %vm481_vm1  ;;  %vm488_vm14 = vcmp.lt.f32.partialorder %v480_v17, 1266679808  ;;  %vm499_vm5 = vcmp.lt.s32.totalorder %v842_v5, 0  ;;  %v517_v29 = vxor.u32 2147483648, %v516_v25  ;;  %645 = vrcp.f32 %v837_v3 }
  0xa9   : > { %v490_v20 = vcvt.f32.s32 %v489_v19  ;;  %vm493_vm11 = vmneg %vm487_vm6 }
  0xaa   : > { %vm502_vm13 = vmand %vm496_vm9, %vm487_vm6  ;;  %vm513_vm6 = vcmp.eq.f32.partialorder %v842_v5, 3212836864 }
  0xab   : > { %v491_v21 = vand.u32 1, %v490_v20  ;;  %vm511_vm15 = vmor %vm850_vm8, %vm856_vm10  ;;  %vm521_vm10 = vcmp.ne.f32.partialorder %v842_v5, %v842_v5 }
  0xac   : > { %v512_v31 = vsel %vm511_vm15, 2139095040, %v733_v1 }
  0xad   : > { %vm492_vm7 = vcmp.eq.s32.totalorder %v491_v21, 1  ;;  %v514_v35 = vsel %vm513_vm6, 1065353216, %v512_v31 }
  0xae   : > { %vm494_vm12 = vmand %vm492_vm7, %vm493_vm11  ;;  %vm501_vm7 = vcmp.eq.f32.partialorder %v476_v6, 2139095040  ;;  %vm522_vm11 = vcmp.ne.f32.partialorder %v232_v15, %v232_v15 }
  0xaf   : > { %vm495_vm2 = vmand %vm488_vm14, %vm494_vm12  ;;  %vm482_vm12 = vcmp.eq.f32.partialorder %v232_v15, 0  ;;  %vm483_vm14 = vcmp.eq.f32.partialorder %v232_v15, 1065353216 }
  0xb0   : > { %v518_v33 = vsel %vm495_vm2, %v517_v29, %v516_v25  ;;  %vm506_vm8 = vmand %vm499_vm5, %vm495_vm2 }
  0xb1   : > { %v519_v37 = vsel %vm496_vm9, %v518_v33, %v516_v25  ;;  %vm523_vm3 = vmor %vm521_vm10, %vm522_vm11 }
  0xb4   : > { %v644_v26 = vpop.eup %643 }
  0xb5   : > { %v503_v27 = vsel %vm502_vm13, 2143289344, %v644_v26  ;;  %vm498_vm13 = vcmp.eq.f32.partialorder %v842_v5, 1065353216  ;;  %v646_v51 = vpop.eup %645 }
  0xb6   : > { %v505_v30 = vsel %vm497_vm4, %v504_v28, %v503_v27  ;;  %vm525_vm4 = vmor %vm498_vm13, %vm482_vm12  ;;  %v532_v52 = vand.u32 2147483647, %v646_v51  ;;  %v537_v54 = vtrunc.f32 %v646_v51  ;;  %vm536_vm6 = vcmp.lt.f32.partialorder %v646_v51, 0 }
  0xb7   : > { %v507_v32 = vxor.u32 2147483648, %v505_v30  ;;  %v568_v60 = vsel %vm536_vm6, 0, %v736_v24  ;;  %v556_v62 = vsel %vm536_vm6, 2139095040, %v733_v1 }
  0xb8   : > { %v541_v53 = vtrunc.f32 %v532_v52  ;;  %vm538_vm9 = vcmp.ne.f32.partialorder %v646_v51, %v537_v54  ;;  %v569_v63 = vxor.u32 2147483648, %v568_v60 }
  0xb9   : > { %v508_v34 = vsel %vm506_vm8, %v507_v32, %v505_v30  ;;  %vm540_vm8 = vcmp.lt.f32.partialorder %v532_v52, 1266679808 }
  0xba   : > { %v515_v36 = vsel %vm481_vm1, %v514_v35, %v508_v34  ;;  %v542_v55 = vcvt.f32.s32 %v541_v53  ;;  %vm533_vm1 = vcmp.eq.f32.partialorder %v532_v52, 2139095040 }
  0xbb   : > { %v520_v38 = vsel %vm501_vm7, %v519_v37, %v515_v36  ;;  %vm885_vm15 = vmor %vm538_vm9, %vm533_vm1 }
  0xbc   : > { %v524_v39 = vsel %vm523_vm3, 2143289344, %v520_v38  ;;  %v543_v58 = vand.u32 1, %v542_v55  ;;  %vm545_vm5 = vmneg %vm885_vm15 }
  0xbd   : > { %v526_v40 = vsel %vm525_vm4, 1065353216, %v524_v39 }
  0xbe   : > { %v527_v41 = vsel %vm483_vm14, %v842_v5, %v526_v40  ;;  %vm544_vm2 = vcmp.eq.s32.totalorder %v543_v58, 1 }
  0xbf   : > { %v237_v42 = vcombine.high %v527_v41, %v527_v41  ;;  %vm546_vm10 = vmand %vm544_vm2, %vm545_vm5 }
  0xc0   : > { %vm892_vm13 = vmand %vm540_vm8, %vm546_vm10  ;;  %vm574_vm8 = vcmp.ne.f32.partialorder %v646_v51, %v646_v51  ;;  %vm534_vm10 = vcmp.eq.f32.partialorder %v646_v51, 0 }
  0xc1   : > { %303 = vmatprep.mubr.f32.mxu0 %v237_v42  ;;  %v570_v5 = vsel %vm892_vm13, %v569_v63, %v568_v60 }
  0xc2   : > { %304 = vmatmul.mubr.f32.vlgmr.msra.gmra.mxu0 %v527_v41 }
 0x182   : > { %v473_v43 = vpop.f32.mrf.mxu0 }
 0x184   : > { %v474_v45 = vpop.f32.mrf.mxu0 }
 0x185   : > { %v475_v46 = vadd.f32 %v474_v45, %v473_v43 }
 0x187   : > { %v309_v47 = vadd.f32 %v475_v46, %v235_v44 }
 0x189   : > { %311 = vst.msk [vmem:[#allocation2] sm:$0xf] %vm217_vm0, %v309_v47 }
 0x190   : > { %v315_v48 = vld [vmem:[#allocation2] sm:$0xf] }
 0x191   : > { %v316_v49 = vmul.f32 0.00390625, %v315_v48 }
 0x193   : > { %v528_v50 = vand.u32 2147483647, %v316_v49  ;;  %vm549_vm11 = vcmp.eq.f32.partialorder %v316_v49, 0  ;;  %vm548_vm3 = vcmp.lt.f32.partialorder %v316_v49, 0  ;;  %vm551_vm2 = vcmp.lt.s32.totalorder %v316_v49, 0 }
 0x194   : > { %vm561_vm4 = vmand %vm536_vm6, %vm549_vm11 }
 0x195   : > { %647 = vlog2.f32 %v528_v50  ;;  %vm552_vm7 = vcmp.gt.f32.partialorder %v528_v50, 1065353216  ;;  %vm554_vm9 = vmand %vm548_vm3, %vm885_vm15  ;;  %vm553_vm15 = vcmp.eq.f32.partialorder %v528_v50, 2139095040 }
 0x196   : > { %vm562_vm12 = vmxor %vm536_vm6, %vm552_vm7  ;;  %vm565_vm6 = vcmp.eq.f32.partialorder %v316_v49, 3212836864  ;;  %vm573_vm7 = vcmp.ne.f32.partialorder %v316_v49, %v316_v49 }
 0x197   : > { %vm563_vm14 = vmor %vm561_vm4, %vm562_vm12  ;;  %vm550_vm12 = vcmp.eq.f32.partialorder %v316_v49, 1065353216 }
 0x198   : > { %v564_v4 = vsel %vm563_vm14, 2139095040, %v733_v1  ;;  %vm558_vm5 = vmand %vm551_vm2, %vm892_vm13  ;;  %v571_v1 = vsel %vm548_vm3, %v570_v5, %v568_v60 }
 0x199   : > { %v566_v8 = vsel %vm565_vm6, 1065353216, %v564_v4  ;;  %vm575_vm4 = vmor %vm573_vm7, %vm574_vm8 }
 0x19a   : > { %vm577_vm13 = vmor %vm550_vm12, %vm534_vm10 }
 0x1a2   : > { %v648_v56 = vpop.eup %647 }
 0x1a3   : > { %v530_v57 = vmul.f32 %v648_v56, %v646_v51 }
 0x1a5   : > { %649 = vpow2.f32 %v530_v57 }
 0x1b2   : > { %v650_v0 = vpop.eup %649 }
 0x1b3   : > { %v555_v2 = vsel %vm554_vm9, 2143289344, %v650_v0 }
 0x1b4   : > { %v557_v3 = vsel %vm549_vm11, %v556_v62, %v555_v2  ;;  %vm535_vm11 = vcmp.eq.f32.partialorder %v646_v51, 1065353216 }
 0x1b5   : > { %v559_v6 = vxor.u32 2147483648, %v557_v3 }
 0x1b7   : > { %v560_v7 = vsel %vm558_vm5, %v559_v6, %v557_v3 }
 0x1b8   : > { %v567_v9 = vsel %vm533_vm1, %v566_v8, %v560_v7 }
 0x1b9   : > { %v572_v10 = vsel %vm553_vm15, %v571_v1, %v567_v9 }
 0x1ba   : > { %v576_v11 = vsel %vm575_vm4, 2143289344, %v572_v10 }
 0x1bb   : > { %v578_v12 = vsel %vm577_vm13, 1065353216, %v576_v11 }
 0x1bc   : > { %v579_v13 = vsel %vm535_vm11, %v316_v49, %v578_v12 }
 0x1bd   : > { %320 = vst.msk [vmem:[%s212_s24] sm:$0xf] %vm217_vm0, %v579_v13 }
 0x1be PF: > { %s15_s14 = sadd.s32 1, %s729_s14   ;;  %s945_s9 = smov %s713_s10 }
 0x1bf   : > { %p12_p8 = scmp.ge.s32.totalorder %s15_s14, 4   ;;  %s946_s10 = smov %s717_s11 }
 0x1c0   : > { %s947_s11 = smov %s801_s21  ;;  %s948_s12 = smov %s725_s13 }
 0x1c1   : > { %s949_s13 = smov %s951_s16  ;;  %14 = sbr.rel (!%p12_p8) target bundleno = 4 (0x4), region = 79 }
 0x1c6   :  { %346 = vsyncpa [#allocation4], 1 }
 0x1c7   :  { %348 = vsyncpa [#allocation4 + $0x1], 1 }

</bundles_post_ra>
